<compile_context>
chip_gen: v7x
topology: tpu7x:2x2x1
jax: 0.10.0
libtpu: 0.0.40
codegen_flags: <defaults>
</compile_context>

<pallas_src>
import functools
import math

import jax
import jax.numpy as jnp
from jax.experimental import pallas as pl
from jax.experimental.pallas import tpu as pltpu


def _round_up(x, m):
    return ((x + m - 1) // m) * m


def _polar_linear_kernel(scale_ref, r_ref, theta_ref, rot_ref,
                         r_out_ref, theta_out_ref, *, t_use, d_out):
    """Elementwise hot path for one batch tile.

    scale_ref:     (1, 1)  f32 in SMEM
    r_ref/r_out:   (TB, input_dim)  or lane-dense (rows_blk, 128)
    theta_ref:     (TB, T)          natural (unpadded) theta width
    rot_ref:       (1, D)           rotations, resident across grid steps
    theta_out_ref: (TB, D)          natural output width (no padded slab)
    """
    s = scale_ref[0, 0]
    r_out_ref[...] = r_ref[...] * s

    rot = rot_ref[...]                               # (1, D)
    tb = theta_out_ref.shape[0]

    if t_use == d_out:
        # Truncation / exact-width path: one full-width store.
        theta_out_ref[...] = theta_ref[:, :t_use] + rot
    elif t_use % 128 == 0:
        # Pad path with a lane-aligned boundary: build the zero-padded tile
        # in vregs (aligned minor-dim concat) and store exactly once.
        zeros = jnp.zeros((tb, d_out - t_use), jnp.float32)
        theta_out_ref[...] = (
            jnp.concatenate([theta_ref[...], zeros], axis=-1) + rot)
    else:
        # Pad path with an unaligned boundary: two *disjoint* stores, each
        # lane written exactly once (same total store traffic as a single
        # full-width store, no duplicated lanes), without relying on
        # unaligned minor-dim concat lowering.
        theta_out_ref[:, :t_use] = theta_ref[...] + rot[:, :t_use]
        theta_out_ref[:, t_use:] = jnp.broadcast_to(
            rot[:, t_use:], (tb, d_out - t_use))


def polar_linear(r, theta, scale, rotations, output_dim,
                 *,
                 vmem_budget_bytes=24 * 1024 * 1024,   # tile-sizing budget
                 vmem_limit_bytes=32 * 1024 * 1024,    # scoped VMEM limit
                 donate_r=False):
    """Forward pass of PolarLinear.

    r:         (B, input_dim) float32
    theta:     (B, T) float32 (zero-padded / truncated to output_dim-1 in-kernel)
    scale:     (1,) float32
    rotations: (output_dim - 1,) float32
    returns (r_out, theta_out) with theta_out of width output_dim - 1.
    """
    assert output_dim >= 2, "output_dim must be >= 2"
    B, input_dim = r.shape
    T = theta.shape[1]
    assert T >= 1
    D = output_dim - 1
    t_use = min(T, D)                       # truncation handled by static slice

    r = r.astype(jnp.float32)
    theta = theta.astype(jnp.float32)
    scale_smem = scale.reshape(1, 1).astype(jnp.float32)
    rot_2d = rotations.astype(jnp.float32).reshape(1, D)

    # ---- batch tile sizing ---------------------------------------------
    # Per-row bytes Pallas holds per pipeline buffer (r in/out, theta in,
    # theta_out), all f32, double-buffered.
    row_bytes = 4 * (2 * input_dim + T + D)
    tb_cap = max(8, (vmem_budget_bytes // (2 * row_bytes)) // 8 * 8)

    if B <= 8:
        TB = B                               # single tile; full-dim block is legal
    else:
        # Aim for >= 2 grid points (ideally 4) so the "parallel" batch axis
        # can be sharded across both v7x TensorCores.
        tb_split = max(8, _round_up(pl.cdiv(B, 4), 8))
        TB = max(8, min(tb_cap, tb_split))   # multiple of 8 when TB < B

    # ---- opportunistic lane/sublane-dense layout for the r path ---------
    # (B, input_dim) with input_dim << 128 wastes 7/8 of every vreg and uses
    # masked stores.  When the reshape is exact, present r as (rows, 128)
    # blocks instead (free metadata reshape on contiguous data).
    use_dense_r = False
    if input_dim % 128 != 0 and (B * input_dim) % 128 == 0 and B > 8:
        if (TB * input_dim) % 1024 != 0:
            need = 1024 // math.gcd(1024, input_dim)      # TB multiple for density
            step = need * 8 // math.gcd(need, 8)          # lcm(need, 8)
            tb_dense = _round_up(TB, step)
            # Only grow TB if it keeps >= 2 grid points and fits the budget.
            if tb_dense <= tb_cap and 2 * tb_dense <= _round_up(B, 8):
                TB = tb_dense
        use_dense_r = (TB * input_dim) % 1024 == 0

    grid = (pl.cdiv(B, TB),)

    if use_dense_r:
        rows_total = (B * input_dim) // 128
        rows_blk = (TB * input_dim) // 128                 # multiple of 8
        r_in = r.reshape(rows_total, 128)
        r_spec = pl.BlockSpec((rows_blk, 128), lambda i: (i, 0))
        r_out_shape = jax.ShapeDtypeStruct((rows_total, 128), jnp.float32)
    else:
        r_in = r
        r_spec = pl.BlockSpec((TB, input_dim), lambda i: (i, 0))
        r_out_shape = jax.ShapeDtypeStruct((B, input_dim), jnp.float32)

    kernel = functools.partial(_polar_linear_kernel, t_use=t_use, d_out=D)

    call_kwargs = {}
    if donate_r:
        # Alias the r input (index 1) onto the r_out output (index 0).
        call_kwargs["input_output_aliases"] = {1: 0}

    r_out, theta_out = pl.pallas_call(
        kernel,
        out_shape=(r_out_shape,
                   jax.ShapeDtypeStruct((B, D), jnp.float32)),
        grid_spec=pltpu.PrefetchScalarGridSpec(
            num_scalar_prefetch=0,
            grid=grid,
            in_specs=[
                pl.BlockSpec(memory_space=pltpu.SMEM),      # scale (1,1)
                r_spec,                                     # r tile
                pl.BlockSpec((TB, T), lambda i: (i, 0)),    # theta tile
                pl.BlockSpec((1, D), lambda i: (0, 0)),     # rotations (resident)
            ],
            out_specs=[
                r_spec,
                pl.BlockSpec((TB, D), lambda i: (i, 0)),    # natural width, no
                                                            # post-kernel slice
            ],
        ),
        compiler_params=pltpu.CompilerParams(
            dimension_semantics=("parallel",),   # batch tiles independent
            vmem_limit_bytes=vmem_limit_bytes,   # v5e: consider 16-24 MiB if
                                                 # coexisting with big fusions
        ),
        **call_kwargs,
    )(scale_smem, r_in, theta, rot_2d)

    if use_dense_r:
        r_out = r_out.reshape(B, input_dim)      # metadata reshape
    return r_out, theta_out


def _reference(r, theta, scale, rotations, output_dim):
    """Plain-JAX reference with the exact torch-module semantics."""
    D = output_dim - 1
    r_out = r * scale
    B, T = theta.shape
    if T < D:
        theta = jnp.concatenate(
            [theta, jnp.zeros((B, D - T), theta.dtype)], axis=1)
    theta_out = theta[:, :D] + rotations
    return r_out, theta_out


if __name__ == "__main__":
    key = jax.random.PRNGKey(0)

    def run_case(batch, input_dim, output_dim, theta_width, seed_key, **kw):
        k_r, k_theta, k_rot = jax.random.split(seed_key, 3)
        r = jax.random.normal(k_r, (batch, input_dim), dtype=jnp.float32)
        theta = jax.random.normal(k_theta, (batch, theta_width),
                                  dtype=jnp.float32)
        # parameter shapes match nn.Parameter(torch.ones(1)) / randn(D)
        scale = jnp.full((1,), 1.5, dtype=jnp.float32)
        rotations = jax.random.normal(k_rot, (output_dim - 1,),
                                      dtype=jnp.float32)

        r_out, theta_out = polar_linear(r, theta, scale, rotations,
                                        output_dim, **kw)
        jax.block_until_ready((r_out, theta_out))

        r_ref, theta_ref = _reference(r, theta, scale, rotations, output_dim)
        assert r_out.shape == (batch, input_dim)
        assert theta_out.shape == (batch, output_dim - 1)
        assert jnp.allclose(r_out, r_ref, atol=1e-6)
        assert jnp.allclose(theta_out, theta_ref, atol=1e-6)

    keys = jax.random.split(key, 6)

    # 1) Small shapes, pad path (unaligned boundary), single tile.
    run_case(batch=8, input_dim=16, output_dim=32, theta_width=8,
             seed_key=keys[0])
    # 2) Multi-tile batch grid, pad path (theta narrower than D).
    run_case(batch=64, input_dim=16, output_dim=32, theta_width=20,
             seed_key=keys[1])
    # 3) Truncation path (theta wider than D), lane-dense D=128.
    run_case(batch=16, input_dim=32, output_dim=129, theta_width=130,
             seed_key=keys[2])
    # 4) Exact-width theta + partial last batch tile (B=20, TB=8, grid=3).
    run_case(batch=20, input_dim=16, output_dim=32, theta_width=31,
             seed_key=keys[3])
    # 5) Lane/sublane-dense r path (TB bumped to 64 -> (8,128) r blocks).
    run_case(batch=128, input_dim=16, output_dim=32, theta_width=16,
             seed_key=keys[4])
    # 6) input_dim already a multiple of 128; pad path with 128-aligned
    #    boundary (single-store aligned concat branch).
    run_case(batch=64, input_dim=128, output_dim=160, theta_width=128,
             seed_key=keys[5])

    print("KERNEL_OK")
</pallas_src>

<mosaic_0001>
module attributes {stable_mosaic.version = 11 : i64} {
  func.func @_polar_linear_kernel(%arg0: i32, %arg1: memref<1x1xf32, #tpu.memory_space<smem>>, %arg2: memref<8x16xf32, #tpu.memory_space<vmem>>, %arg3: memref<8x8xf32, #tpu.memory_space<vmem>>, %arg4: memref<1x31xf32, #tpu.memory_space<vmem>>, %arg5: memref<8x16xf32, #tpu.memory_space<vmem>>, %arg6: memref<8x31xf32, #tpu.memory_space<vmem>>) attributes {dimension_semantics = [#tpu.dimension_semantics<parallel>], iteration_bounds = array<i64: 1>, scalar_prefetch = 0 : i64, scratch_operands = 0 : i64, tpu.core_type = #tpu.core_type<tc>, window_params = [{transform_indices = @transform_0, window_bounds = array<i64: 1, 1>}, {transform_indices = @transform_1, window_bounds = array<i64: 8, 16>}, {transform_indices = @transform_2, window_bounds = array<i64: 8, 8>}, {pipeline_mode = #tpu.pipeline_mode<synchronous>, transform_indices = @transform_3, window_bounds = array<i64: 1, 31>}, {transform_indices = @transform_4, window_bounds = array<i64: 8, 16>}, {transform_indices = @transform_5, window_bounds = array<i64: 8, 31>}]} {
    %c0 = arith.constant 0 : index
    %c0_0 = arith.constant 0 : index
    %0 = memref.load %arg1[%c0, %c0_0] : memref<1x1xf32, #tpu.memory_space<smem>>
    %c0_1 = arith.constant 0 : index
    %c0_2 = arith.constant 0 : index
    %1 = vector.load %arg2[%c0_1, %c0_2] : memref<8x16xf32, #tpu.memory_space<vmem>>, vector<8x16xf32>
    %2 = vector.broadcast %0 : f32 to vector<8x16xf32>
    %3 = arith.mulf %1, %2 : vector<8x16xf32>
    %c0_3 = arith.constant 0 : index
    %c0_4 = arith.constant 0 : index
    %4 = vector.load %arg5[%c0_3, %c0_4] : memref<8x16xf32, #tpu.memory_space<vmem>>, vector<8x16xf32>
    tpu.vector_store %arg5[%c0_3, %c0_4], %3 {strides = array<i32>} : memref<8x16xf32, #tpu.memory_space<vmem>>, vector<8x16xf32>,
    %c0_5 = arith.constant 0 : index
    %c0_6 = arith.constant 0 : index
    %5 = vector.load %arg4[%c0_5, %c0_6] : memref<1x31xf32, #tpu.memory_space<vmem>>, vector<1x31xf32>
    %c0_7 = arith.constant 0 : index
    %c0_8 = arith.constant 0 : index
    %6 = vector.load %arg3[%c0_7, %c0_8] : memref<8x8xf32, #tpu.memory_space<vmem>>, vector<8x8xf32>
    %7 = vector.extract_strided_slice %5 {offsets = [0, 0], sizes = [1, 8], strides = [1, 1]} : vector<1x31xf32> to vector<1x8xf32>
    %8 = vector.broadcast %7 : vector<1x8xf32> to vector<8x8xf32>
    %9 = arith.addf %6, %8 : vector<8x8xf32>
    %c0_9 = arith.constant 0 : index
    %c0_10 = arith.constant 0 : index
    %10 = vector.load %arg6[%c0_9, %c0_10] : memref<8x31xf32, #tpu.memory_space<vmem>>, vector<8x8xf32>
    tpu.vector_store %arg6[%c0_9, %c0_10], %9 {strides = array<i32>} : memref<8x31xf32, #tpu.memory_space<vmem>>, vector<8x8xf32>,
    %11 = vector.extract_strided_slice %5 {offsets = [0, 8], sizes = [1, 23], strides = [1, 1]} : vector<1x31xf32> to vector<1x23xf32>
    %12 = vector.shape_cast %11 : vector<1x23xf32> to vector<1x23xf32>
    %13 = vector.broadcast %12 : vector<1x23xf32> to vector<8x23xf32>
    %c0_11 = arith.constant 0 : index
    %c8 = arith.constant 8 : index
    %14 = vector.load %arg6[%c0_11, %c8] : memref<8x31xf32, #tpu.memory_space<vmem>>, vector<8x23xf32>
    tpu.vector_store %arg6[%c0_11, %c8], %13 {strides = array<i32>} : memref<8x31xf32, #tpu.memory_space<vmem>>, vector<8x23xf32>,
    return
  }
  func.func @transform_0(%arg0: i32) -> (i32, i32) {
    %c0_i32 = arith.constant 0 : i32
    %c0_i32_0 = arith.constant 0 : i32
    %c0_i32_1 = arith.constant 0 : i32
    return %c0_i32, %c0_i32_0 : i32, i32
  }
  func.func @transform_1(%arg0: i32) -> (i32, i32) {
    %c0_i32 = arith.constant 0 : i32
    %c0_i32_0 = arith.constant 0 : i32
    return %arg0, %c0_i32 : i32, i32
  }
  func.func @transform_2(%arg0: i32) -> (i32, i32) {
    %c0_i32 = arith.constant 0 : i32
    %c0_i32_0 = arith.constant 0 : i32
    return %arg0, %c0_i32 : i32, i32
  }
  func.func @transform_3(%arg0: i32) -> (i32, i32) {
    %c0_i32 = arith.constant 0 : i32
    %c0_i32_0 = arith.constant 0 : i32
    %c0_i32_1 = arith.constant 0 : i32
    return %c0_i32, %c0_i32_0 : i32, i32
  }
  func.func @transform_4(%arg0: i32) -> (i32, i32) {
    %c0_i32 = arith.constant 0 : i32
    %c0_i32_0 = arith.constant 0 : i32
    return %arg0, %c0_i32 : i32, i32
  }
  func.func @transform_5(%arg0: i32) -> (i32, i32) {
    %c0_i32 = arith.constant 0 : i32
    %c0_i32_0 = arith.constant 0 : i32
    return %arg0, %c0_i32 : i32, i32
  }
}

</mosaic_0001>

<bundles_post_ra>
// kernel: tpu_custom_call.1
= control target key start
LH: loop header
LB: loop body
LE: loop exit
PB: predicated region body
PF: predicated region fallthrough
CT: control target
= control target key end

     0   :  { %12 = vsyncpa [#allocation4], 0  ;;  %s291_s0 = inlined_call_operand.<no memory space> [shape: f32[1,1], index: 0, kind: input, shape index: {}]   ;;  %s292_s1 = inlined_call_operand.hbm [shape: f32[8,16], index: 1, kind: input, shape index: {}]   ;;  %s293_s2 = inlined_call_operand.hbm [shape: f32[8,8], index: 2, kind: input, shape index: {}]   ;;  %s294_s3 = inlined_call_operand.vmem [shape: f32[1,31], index: 3, kind: input, shape index: {}]   ;;  %s295_s4 = inlined_call_operand.hbm [shape: f32[8,16], index: 4, kind: output, shape index: {0}]   ;;  %s296_s5 = inlined_call_operand.hbm [shape: f32[8,31], index: 5, kind: output, shape index: {1}]  }
   0x1   :  { %13 = vsyncpa [#allocation7], 0 }
   0x2   :  { %14 = vsyncpa [#allocation5], 0 }
   0x3   :  { %15 = vsyncpa [#allocation10], 0  ;;  %s196_s18 = smov [#allocation3]   ;;  %s197_s20 = smov [#allocation6]  }
   0x4   :  { %s24_s19 = sshll.u32 %s196_s18, 4  ;;  %s34_s21 = sshll.u32 %s197_s20, 4  ;;  %s25_s19 = int_to_ptr.vmem [resolvable:$true] %s24_s19  ;;  %s35_s21 = int_to_ptr.vmem [resolvable:$true] %s34_s21 }
   0x5   :  { %s100_s24 = scalar_lea.hbm %s292_s1, 128 }
   0x6   :  { %p101_p0 = scmp.ne.s32.totalorder %s292_s1, %s100_s24  ;;  %p104_p1 = scmp.lt.u32.totalorder %s100_s24, %s292_s1 }
   0x8   :  { %p106_p2 = pnand %p104_p1, %p101_p0 }
   0xa   :  { %109 = shalt.err (!%p106_p2)
}
   0xb   :  { %s110_s29 = scalar_lea.vmem %s25_s19, 128  ;;  %p115_p4 = scmp.lt.s32.totalorder %s25_s19, %s25_s19 }
   0xc   :  { %p111_p3 = scmp.ne.s32.totalorder %s25_s19, %s110_s29  ;;  %p116_p5 = scmp.lt.s32.totalorder %s110_s29, %s110_s29 }
   0xe   :  { %p117_p6 = por %p116_p5, %p115_p4 }
  0x10   :  { %p118_p7 = pnand %p117_p6, %p111_p3 }
  0x12   :  { %121 = shalt.err (!%p118_p7)
}
  0x13   :  { %27 = dma.hbm_to_vmem [thread:$0]  %s292_s1, 128, %s25_s19, [#allocation4]  }
  0x14   :  { %s122_s9 = scalar_lea.hbm %s293_s2, 128 }
  0x15   :  { %p123_p8 = scmp.ne.s32.totalorder %s293_s2, %s122_s9  ;;  %p126_p9 = scmp.lt.u32.totalorder %s122_s9, %s293_s2 }
  0x17   :  { %p128_p10 = pnand %p126_p9, %p123_p8 }
  0x19   :  { %131 = shalt.err (!%p128_p10)
}
  0x1a   :  { %s132_s14 = scalar_lea.vmem %s35_s21, 128  ;;  %p137_p12 = scmp.lt.s32.totalorder %s35_s21, %s35_s21 }
  0x1b   :  { %p133_p11 = scmp.ne.s32.totalorder %s35_s21, %s132_s14  ;;  %p138_p13 = scmp.lt.s32.totalorder %s132_s14, %s132_s14 }
  0x1d   :  { %p139_p0 = por %p138_p13, %p137_p12 }
  0x1f   :  { %p140_p1 = pnand %p139_p0, %p133_p11 }
  0x21   :  { %143 = shalt.err (!%p140_p1)
}
  0x22   :  { %37 = dma.hbm_to_vmem [thread:$0]  %s293_s2, 128, %s35_s21, [#allocation7]  }
  0x23   :  { %188 = dma.done.wait [#allocation4], 128  }
  0x24   :  { %189 = vsyncadd [#allocation4], 4294967168 }
  0x25   :  { %190 = dma.done.wait [#allocation7], 128  }
  0x26   :  { %191 = vsyncadd [#allocation7], 4294967168  ;;  %v48_v0 = vstv %s291_s0  ;;  %s198_s18 = smov [#allocation8]   ;;  %s199_s20 = smov [#allocation9]   ;;  %v95_v1 = vld [vmem:[%s294_s3] ss:$0 sm:$0xff] }
  0x27   :  { %s71_s19 = sshll.u32 %s198_s18, 4  ;;  %s81_s22 = sshll.u32 %s199_s20, 4  ;;  %v53_v2 = vld [vmem:[#allocation6] sm:$0xff]  ;;  %vm61_vm0 = vcmask 64512   ;;  %v47_v3 = vld [vmem:[#allocation3] sm:$0xff]  ;;  %vm50_vm1 = vcmask 130048   ;;  %s72_s19 = int_to_ptr.vmem [resolvable:$true] %s71_s19  ;;  %s260_s22 = int_to_ptr.vmem [resolvable:$true] %s81_s22 }
  0x28   :  { %v60_v4 = vadd.f32 %v95_v1, %v53_v2  ;;  %v49_v5 = vmul.f32 %v48_v0, %v47_v3  ;;  %vm63_vm2 = vcmask 252992   ;;  %s144_s0 = scalar_lea.vmem %s72_s19, 128  ;;  %p149_p3 = scmp.lt.s32.totalorder %s72_s19, %s72_s19 }
  0x29   :  { %p145_p2 = scmp.ne.s32.totalorder %s72_s19, %s144_s0  ;;  %p150_p4 = scmp.lt.s32.totalorder %s144_s0, %s144_s0 }
  0x2a   :  { %62 = vst.msk [vmem:[#allocation9] sm:$0xff] %vm61_vm0, %v60_v4 }
  0x2b   :  { %51 = vst.msk [vmem:[#allocation8] sm:$0xff] %vm50_vm1, %v49_v5  ;;  %p151_p5 = por %p150_p4, %p149_p3 }
  0x2c   :  { %64 = vst.msk [vmem:[#allocation9] sm:$0xff] %vm63_vm2, %v95_v1 }
  0x2d   :  { %p152_p6 = pnand %p151_p5, %p145_p2 }
  0x2f   :  { %155 = shalt.err (!%p152_p6)
}
  0x30   :  { %s156_s21 = scalar_lea.hbm %s295_s4, 128 }
  0x31   :  { %p157_p7 = scmp.ne.s32.totalorder %s295_s4, %s156_s21  ;;  %p160_p8 = scmp.lt.u32.totalorder %s156_s21, %s295_s4 }
  0x33   :  { %p162_p9 = pnand %p160_p8, %p157_p7 }
  0x35   :  { %165 = shalt.err (!%p162_p9)
}
  0x36   :  { %74 = dma.vmem_to_hbm [thread:$0]  %s72_s19, 128, %s295_s4, [#allocation5]  }
  0x37   :  { %s166_s6 = scalar_lea.vmem %s260_s22, 128  ;;  %p171_p11 = scmp.lt.s32.totalorder %s260_s22, %s260_s22 }
  0x38   :  { %p167_p10 = scmp.ne.s32.totalorder %s260_s22, %s166_s6  ;;  %p172_p12 = scmp.lt.s32.totalorder %s166_s6, %s166_s6 }
  0x3a   :  { %p173_p13 = por %p172_p12, %p171_p11 }
  0x3c   :  { %p174_p0 = pnand %p173_p13, %p167_p10 }
  0x3e   :  { %177 = shalt.err (!%p174_p0)
}
  0x3f   :  { %s178_s9 = scalar_lea.hbm %s296_s5, 128 }
  0x40   :  { %p179_p1 = scmp.ne.s32.totalorder %s296_s5, %s178_s9  ;;  %p182_p2 = scmp.lt.u32.totalorder %s178_s9, %s296_s5 }
  0x42   :  { %p184_p3 = pnand %p182_p2, %p179_p1 }
  0x44   :  { %187 = shalt.err (!%p184_p3)
}
  0x45   :  { %84 = dma.vmem_to_hbm [thread:$0]  %s260_s22, 128, %s296_s5, [#allocation10]  }
  0x46   :  { %192 = dma.done.wait [#allocation5], 128  }
  0x47   :  { %193 = vsyncadd [#allocation5], 4294967168 }
  0x48   :  { %194 = dma.done.wait [#allocation10], 128  }
  0x49   :  { %195 = vsyncadd [#allocation10], 4294967168 }
  0x4a   :  { %91 = vsyncpa [#allocation4], 1 }
  0x4b   :  { %92 = vsyncpa [#allocation7], 1 }
  0x4c   :  { %93 = vsyncpa [#allocation5], 1 }
  0x4d   :  { %94 = vsyncpa [#allocation10], 1 }

</bundles_post_ra>
